<compile_context>
chip_gen: v5e
topology: v5e:2x2
jax: 0.10.0
libtpu: 0.0.40
codegen_flags: <defaults>
</compile_context>

<pallas_src>
import functools

import jax
import jax.numpy as jnp
from jax.experimental import pallas as pl
from jax.experimental.pallas import tpu as pltpu


def _round_up(v, m):
    return ((v + m - 1) // m) * m


def nre_loss(theta, x, params, *, tm=1024, mxu_dtype=jnp.bfloat16):
    """JAX wrapper reproducing NRELoss.forward(theta, x) with one Pallas kernel."""
    w1, b1, w2, b2, w3, b3 = params
    n, d = theta.shape
    l = x.shape[1]
    h = w2.shape[0]
    assert h == 128, "kernel assumes a lane-dense hidden width of 128"
    assert w1.shape[0] == d + l and w2.shape == (h, h)

    fp = _round_up(d + l, 16)            # contraction dim, bf16-sublane aligned
    r = 2 * n                            # positive rows + shuffled rows
    tm = _round_up(max(8, min(tm, _round_up(r, 8))), 8)
    num_tiles = pl.cdiv(r, tm)
    r_pad = num_tiles * tm

    theta_f = theta.astype(jnp.float32)
    theta_prime = jnp.roll(theta_f, 1, axis=0)        # torch.roll(theta, 1, 0)
    x_f = x.astype(jnp.float32)

    # Single feature stream: [theta_i | x_i] then [theta_{i-1} | x_i].
    feat = jnp.concatenate(
        [jnp.concatenate([theta_f, x_f], axis=1),
         jnp.concatenate([theta_prime, x_f], axis=1)], axis=0)
    feat = jnp.pad(feat, ((0, r_pad - r), (0, fp - (d + l)))).astype(mxu_dtype)

    w1_p = jnp.pad(w1.astype(jnp.float32),
                   ((0, fp - (d + l)), (0, 0))).astype(mxu_dtype)   # (fp, h)
    w2_p = w2.astype(mxu_dtype)                                     # (h, h)

    # Small f32 pack kept on the VPU path: row 0 = b1, row 1 = b2, row 2 = w3.
    bias_pack = jnp.stack([b1.reshape(-1).astype(jnp.float32),
                           b2.reshape(-1).astype(jnp.float32),
                           w3.reshape(-1).astype(jnp.float32)], axis=0)  # (3, h)
    b3_s = jnp.reshape(b3, (1, 1)).astype(jnp.float32)

    def kernel(feat_ref, w1_ref, w2_ref, bias_ref, b3_ref, out_ref):
        i = pl.program_id(0)

        bp = bias_ref[...]                # (3, h) f32
        b1v = bp[0:1, :]
        b2v = bp[1:2, :]
        w3r = bp[2:3, :]

        # Layer 1 (MXU, one pass for both branches since they share the stream).
        h1 = jnp.maximum(
            jnp.dot(feat_ref[...], w1_ref[...],
                    preferred_element_type=jnp.float32) + b1v, 0.0)      # (tm, h)

        # Layer 2 (MXU, bf16 operands / f32 accumulation by default).
        h2 = jnp.maximum(
            jnp.dot(h1.astype(mxu_dtype), w2_ref[...],
                    preferred_element_type=jnp.float32) + b2v, 0.0)      # (tm, h)

        # Layer 3: 1-wide output -> VPU multiply + XLU lane reduction.
        z = jnp.sum(h2 * w3r, axis=-1, keepdims=True) + b3_ref[0, 0]     # (tm, 1)

        # Rows [0, N): -logsigmoid(z)  = softplus(-z)
        # Rows [N,2N): -logsigmoid(-z) = softplus(+z)
        row = jax.lax.broadcasted_iota(jnp.int32, (tm, 1), 0)
        g = i * tm + row
        sign = jnp.where(g < n, jnp.float32(-1.0), jnp.float32(1.0))
        valid = g < r
        t = jnp.where(valid, sign * z, jnp.float32(0.0))   # mask before exp/log1p
        sp = jnp.maximum(t, 0.0) + jnp.log1p(jnp.exp(-jnp.abs(t)))
        out_ref[...] = jnp.where(valid, sp, jnp.float32(0.0))

    isz = jnp.dtype(mxu_dtype).itemsize
    flops = 2 * r_pad * fp * h + 2 * r_pad * h * h + 6 * r_pad * h
    bytes_accessed = (r_pad * fp * isz + fp * h * isz + h * h * isz
                      + 3 * h * 4 + r_pad * 4 + 4)

    sp_out = pl.pallas_call(
        kernel,
        out_shape=jax.ShapeDtypeStruct((r_pad, 1), jnp.float32),
        grid_spec=pltpu.PrefetchScalarGridSpec(
            num_scalar_prefetch=0,
            grid=(num_tiles,),
            in_specs=[
                pl.BlockSpec((tm, fp), lambda i: (i, 0)),      # feature stream
                pl.BlockSpec((fp, h), lambda i: (0, 0)),       # w1 (resident)
                pl.BlockSpec((h, h), lambda i: (0, 0)),        # w2 (resident)
                pl.BlockSpec((3, h), lambda i: (0, 0)),        # b1/b2/w3 (resident)
                pl.BlockSpec(memory_space=pltpu.MemorySpace.SMEM),  # b3 scalar
            ],
            out_specs=pl.BlockSpec((tm, 1), lambda i: (i, 0)),  # per-row softplus
        ),
        compiler_params=pltpu.CompilerParams(
            dimension_semantics=("parallel",)),   # tiles are independent
        cost_estimate=pl.CostEstimate(
            flops=flops, transcendentals=2 * r_pad, bytes_accessed=bytes_accessed),
    )(feat, w1_p, w2_p, bias_pack, b3_s)

    # Exact mean over the true N; padding rows contribute exactly 0.
    return jnp.sum(sp_out) / (2.0 * n)


def init_params(key, d_theta, d_x, hidden):
    """Deterministic MLP estimator parameters, (in, out) layout."""
    k1, k2, k3 = jax.random.split(key, 3)
    din = d_theta + d_x
    w1 = jax.random.normal(k1, (din, hidden), jnp.float32) / jnp.sqrt(din)
    b1 = jnp.zeros((1, hidden), jnp.float32)
    w2 = jax.random.normal(k2, (hidden, hidden), jnp.float32) / jnp.sqrt(hidden)
    b2 = jnp.zeros((1, hidden), jnp.float32)
    w3 = jax.random.normal(k3, (hidden, 1), jnp.float32) / jnp.sqrt(hidden)
    b3 = jnp.zeros((1, 1), jnp.float32)
    return (w1, b1, w2, b2, w3, b3)


def nre_loss_reference(theta, x, params):
    """Pure-JAX reference for correctness checking."""
    w1, b1, w2, b2, w3, b3 = params
    hp = jax.lax.Precision.HIGHEST

    def log_r(t):
        f = jnp.concatenate([t, x], axis=-1)
        h1 = jax.nn.relu(jnp.dot(f, w1, precision=hp) + b1)
        h2 = jax.nn.relu(jnp.dot(h1, w2, precision=hp) + b2)
        return jnp.dot(h2, w3, precision=hp) + b3

    lr = log_r(theta)
    lrp = log_r(jnp.roll(theta, 1, axis=0))
    l1 = -jnp.mean(jax.nn.log_sigmoid(lr))
    l0 = -jnp.mean(jax.nn.log_sigmoid(-lrp))
    return (l1 + l0) / 2


if __name__ == "__main__":
    N, D, L, H = 8, 4, 8, 128   # H = 128 -> lane-dense activations/weights

    key = jax.random.PRNGKey(0)
    k_theta, k_x, k_params = jax.random.split(key, 3)
    theta = jax.random.normal(k_theta, (N, D), jnp.float32)
    x = jax.random.normal(k_x, (N, L), jnp.float32)
    params = init_params(k_params, D, L, H)

    ref = jax.block_until_ready(nre_loss_reference(theta, x, params))

    # Tight correctness gate: f32 MXU operands.
    loss_f32 = jax.block_until_ready(
        nre_loss(theta, x, params, mxu_dtype=jnp.float32))
    assert jnp.isfinite(loss_f32), "f32 loss is not finite"
    assert jnp.allclose(loss_f32, ref, rtol=1e-4, atol=1e-5), (loss_f32, ref)

    # Production path: bf16 MXU operands with f32 accumulation (looser check).
    loss_bf16 = jax.block_until_ready(
        nre_loss(theta, x, params, mxu_dtype=jnp.bfloat16))
    assert jnp.isfinite(loss_bf16), "bf16 loss is not finite"
    assert jnp.allclose(loss_bf16, ref, rtol=3e-2, atol=3e-2), (loss_bf16, ref)

    print("KERNEL_OK")
</pallas_src>

<mosaic_0001>
module attributes {stable_mosaic.version = 11 : i64} {
  func.func @kernel(%arg0: i32, %arg1: memref<16x16xf32, #tpu.memory_space<vmem>>, %arg2: memref<16x128xf32, #tpu.memory_space<vmem>>, %arg3: memref<128x128xf32, #tpu.memory_space<vmem>>, %arg4: memref<3x128xf32, #tpu.memory_space<vmem>>, %arg5: memref<1x1xf32, #tpu.memory_space<smem>>, %arg6: memref<16x1xf32, #tpu.memory_space<vmem>>) attributes {dimension_semantics = [#tpu.dimension_semantics<parallel>], iteration_bounds = array<i64: 1>, scalar_prefetch = 0 : i64, scratch_operands = 0 : i64, tpu.core_type = #tpu.core_type<tc>, window_params = [{transform_indices = @transform_0, window_bounds = array<i64: 16, 16>}, {pipeline_mode = #tpu.pipeline_mode<synchronous>, transform_indices = @transform_1, window_bounds = array<i64: 16, 128>}, {pipeline_mode = #tpu.pipeline_mode<synchronous>, transform_indices = @transform_2, window_bounds = array<i64: 128, 128>}, {pipeline_mode = #tpu.pipeline_mode<synchronous>, transform_indices = @transform_3, window_bounds = array<i64: 3, 128>}, {transform_indices = @transform_4, window_bounds = array<i64: 1, 1>}, {transform_indices = @transform_5, window_bounds = array<i64: 16, 1>}]} {
    %c0 = arith.constant 0 : index
    %c0_0 = arith.constant 0 : index
    %0 = vector.load %arg4[%c0, %c0_0] : memref<3x128xf32, #tpu.memory_space<vmem>>, vector<3x128xf32>
    %1 = vector.extract_strided_slice %0 {offsets = [0, 0], sizes = [1, 128], strides = [1, 1]} : vector<3x128xf32> to vector<1x128xf32>
    %2 = vector.extract_strided_slice %0 {offsets = [1, 0], sizes = [1, 128], strides = [1, 1]} : vector<3x128xf32> to vector<1x128xf32>
    %3 = vector.extract_strided_slice %0 {offsets = [2, 0], sizes = [1, 128], strides = [1, 1]} : vector<3x128xf32> to vector<1x128xf32>
    %c0_1 = arith.constant 0 : index
    %c0_2 = arith.constant 0 : index
    %4 = vector.load %arg1[%c0_1, %c0_2] : memref<16x16xf32, #tpu.memory_space<vmem>>, vector<16x16xf32>
    %c0_3 = arith.constant 0 : index
    %c0_4 = arith.constant 0 : index
    %5 = vector.load %arg2[%c0_3, %c0_4] : memref<16x128xf32, #tpu.memory_space<vmem>>, vector<16x128xf32>
    %cst = arith.constant dense<0.000000e+00> : vector<16x128xf32>
    %6 = tpu.matmul %4, %5, %cst {dimension_numbers = #tpu.dot_dimension_numbers<[1], [0], [0], [1], [0, 0, 1, 1], [], []>} : vector<16x16xf32>, vector<16x128xf32>, vector<16x128xf32> -> vector<16x128xf32>
    %7 = vector.broadcast %1 : vector<1x128xf32> to vector<16x128xf32>
    %8 = arith.addf %6, %7 : vector<16x128xf32>
    %cst_5 = arith.constant 0.000000e+00 : f32
    %9 = vector.broadcast %cst_5 : f32 to vector<16x128xf32>
    %10 = arith.maximumf %8, %9 : vector<16x128xf32>
    %c0_6 = arith.constant 0 : index
    %c0_7 = arith.constant 0 : index
    %11 = vector.load %arg3[%c0_6, %c0_7] : memref<128x128xf32, #tpu.memory_space<vmem>>, vector<128x128xf32>
    %cst_8 = arith.constant dense<0.000000e+00> : vector<16x128xf32>
    %12 = tpu.matmul %10, %11, %cst_8 {dimension_numbers = #tpu.dot_dimension_numbers<[1], [0], [0], [1], [0, 0, 1, 1], [], []>} : vector<16x128xf32>, vector<128x128xf32>, vector<16x128xf32> -> vector<16x128xf32>
    %13 = vector.broadcast %2 : vector<1x128xf32> to vector<16x128xf32>
    %14 = arith.addf %12, %13 : vector<16x128xf32>
    %cst_9 = arith.constant 0.000000e+00 : f32
    %15 = vector.broadcast %cst_9 : f32 to vector<16x128xf32>
    %16 = arith.maximumf %14, %15 : vector<16x128xf32>
    %17 = vector.broadcast %3 : vector<1x128xf32> to vector<16x128xf32>
    %18 = arith.mulf %16, %17 : vector<16x128xf32>
    %cst_10 = arith.constant dense<0.000000e+00> : vector<16xf32>
    %19 = vector.multi_reduction <add>, %18, %cst_10 [1] : vector<16x128xf32> to vector<16xf32>
    %20 = vector.shape_cast %19 : vector<16xf32> to vector<16x1xf32>
    %c0_11 = arith.constant 0 : index
    %c0_12 = arith.constant 0 : index
    %21 = memref.load %arg5[%c0_11, %c0_12] : memref<1x1xf32, #tpu.memory_space<smem>>
    %22 = vector.broadcast %21 : f32 to vector<16x1xf32>
    %23 = arith.addf %20, %22 : vector<16x1xf32>
    %24 = tpu.iota {dimensions = array<i32: 0>} : vector<16x1xi32>
    %c16_i32 = arith.constant 16 : i32
    %25 = arith.muli %arg0, %c16_i32 : i32
    %26 = vector.broadcast %25 : i32 to vector<16x1xi32>
    %27 = arith.addi %26, %24 : vector<16x1xi32>
    %c8_i32 = arith.constant 8 : i32
    %28 = vector.broadcast %c8_i32 : i32 to vector<16x1xi32>
    %29 = arith.cmpi slt, %27, %28 : vector<16x1xi32>
    %cst_13 = arith.constant -1.000000e+00 : f32
    %cst_14 = arith.constant 1.000000e+00 : f32
    %30 = vector.broadcast %cst_13 : f32 to vector<16x1xf32>
    %31 = vector.broadcast %cst_14 : f32 to vector<16x1xf32>
    %32 = arith.select %29, %30, %31 : vector<16x1xi1>, vector<16x1xf32>
    %c16_i32_15 = arith.constant 16 : i32
    %33 = vector.broadcast %c16_i32_15 : i32 to vector<16x1xi32>
    %34 = arith.cmpi slt, %27, %33 : vector<16x1xi32>
    %35 = arith.mulf %32, %23 : vector<16x1xf32>
    %cst_16 = arith.constant 0.000000e+00 : f32
    %36 = vector.broadcast %cst_16 : f32 to vector<16x1xf32>
    %37 = arith.select %34, %35, %36 : vector<16x1xi1>, vector<16x1xf32>
    %cst_17 = arith.constant 0.000000e+00 : f32
    %38 = vector.broadcast %cst_17 : f32 to vector<16x1xf32>
    %39 = arith.maximumf %37, %38 : vector<16x1xf32>
    %40 = math.absf %37 : vector<16x1xf32>
    %cst_18 = arith.constant 0.000000e+00 : f32
    %41 = vector.broadcast %cst_18 : f32 to vector<16x1xf32>
    %42 = arith.subf %41, %40 : vector<16x1xf32>
    %43 = math.exp %42 : vector<16x1xf32>
    %44 = math.log1p %43 : vector<16x1xf32>
    %45 = arith.addf %39, %44 : vector<16x1xf32>
    %cst_19 = arith.constant 0.000000e+00 : f32
    %46 = vector.broadcast %cst_19 : f32 to vector<16x1xf32>
    %47 = arith.select %34, %45, %46 : vector<16x1xi1>, vector<16x1xf32>
    %c0_20 = arith.constant 0 : index
    %c0_21 = arith.constant 0 : index
    %48 = vector.load %arg6[%c0_20, %c0_21] : memref<16x1xf32, #tpu.memory_space<vmem>>, vector<16x1xf32>
    tpu.vector_store %arg6[%c0_20, %c0_21], %47 {strides = array<i32>} : memref<16x1xf32, #tpu.memory_space<vmem>>, vector<16x1xf32>,
    return
  }
  func.func @transform_0(%arg0: i32) -> (i32, i32) {
    %c0_i32 = arith.constant 0 : i32
    %c0_i32_0 = arith.constant 0 : i32
    return %arg0, %c0_i32 : i32, i32
  }
  func.func @transform_1(%arg0: i32) -> (i32, i32) {
    %c0_i32 = arith.constant 0 : i32
    %c0_i32_0 = arith.constant 0 : i32
    %c0_i32_1 = arith.constant 0 : i32
    return %c0_i32, %c0_i32_0 : i32, i32
  }
  func.func @transform_2(%arg0: i32) -> (i32, i32) {
    %c0_i32 = arith.constant 0 : i32
    %c0_i32_0 = arith.constant 0 : i32
    %c0_i32_1 = arith.constant 0 : i32
    return %c0_i32, %c0_i32_0 : i32, i32
  }
  func.func @transform_3(%arg0: i32) -> (i32, i32) {
    %c0_i32 = arith.constant 0 : i32
    %c0_i32_0 = arith.constant 0 : i32
    %c0_i32_1 = arith.constant 0 : i32
    return %c0_i32, %c0_i32_0 : i32, i32
  }
  func.func @transform_4(%arg0: i32) -> (i32, i32) {
    %c0_i32 = arith.constant 0 : i32
    %c0_i32_0 = arith.constant 0 : i32
    %c0_i32_1 = arith.constant 0 : i32
    return %c0_i32, %c0_i32_0 : i32, i32
  }
  func.func @transform_5(%arg0: i32) -> (i32, i32) {
    %c0_i32 = arith.constant 0 : i32
    %c0_i32_0 = arith.constant 0 : i32
    return %arg0, %c0_i32 : i32, i32
  }
}

</mosaic_0001>

<bundles_post_ra>
// kernel: tpu_custom_call.1
= control target key start
LH: loop header
LB: loop body
LE: loop exit
PB: predicated region body
PF: predicated region fallthrough
CT: control target
= control target key end

     0   :  { %11 = vsyncpa [#allocation4], 0  ;;  %s384_s0 = inlined_call_operand.hbm [shape: f32[16,16], index: 0, kind: input, shape index: {}]   ;;  %s385_s1 = inlined_call_operand.hbm [shape: f32[16,128], index: 1, kind: input, shape index: {}]   ;;  %s386_s2 = inlined_call_operand.hbm [shape: f32[128,128], index: 2, kind: input, shape index: {}]   ;;  %s387_s3 = inlined_call_operand.vmem [shape: f32[3,128], index: 3, kind: input, shape index: {}]   ;;  %s388_s4 = inlined_call_operand.<no memory space> [shape: f32[1,1], index: 4, kind: input, shape index: {}]   ;;  %s389_s5 = inlined_call_operand.vmem [shape: f32[16,1], index: 5, kind: output, shape index: {}]  }
   0x1   :  { %12 = vsyncpa [#allocation6], 0  ;;  %s30_s20 = sshll.u32 %s385_s1, 4  ;;  %s324_s21 = smov [#allocation5]   ;;  %s31_s20 = int_to_ptr.hbm [resolvable:$true] %s30_s20 }
   0x2   :  { %s32_s22 = sshll.u32 %s324_s21, 4  ;;  %s17_s25 = sshll.u32 %s384_s0, 4  ;;  %s33_s22 = int_to_ptr.vmem [resolvable:$true] %s32_s22  ;;  %s18_s25 = int_to_ptr.hbm [resolvable:$true] %s17_s25 }
   0x3   :  { %s325_s26 = smov 128   ;;  %s326_s27 = smov 8  }
   0x4   :  { %38 = dma.hbm_to_vmem [thread:$0]  %s31_s20, 256, %s33_s22, [#allocation6], %s325_s26, %s325_s26, %s326_s27  }
   0x5   :  { %s327_s28 = smov [#allocation3]   ;;  %s43_s7 = sshll.u32 %s386_s2, 4  ;;  %s44_s7 = int_to_ptr.hbm [resolvable:$true] %s43_s7 }
   0x6   :  { %s19_s29 = sshll.u32 %s327_s28, 4  ;;  %s328_s1 = smov [#allocation7]   ;;  %s20_s29 = int_to_ptr.vmem [resolvable:$true] %s19_s29 }
   0x7   :  { %25 = dma.hbm_to_vmem [thread:$0]  %s18_s25, 256, %s20_s29, [#allocation4], %s325_s26, %s325_s26, %s326_s27  }
   0x8   :  { %s45_s8 = sshll.u32 %s328_s1, 4  ;;  %s46_s8 = int_to_ptr.vmem [resolvable:$true] %s45_s8 }
   0x9   :  { %51 = dma.hbm_to_vmem [thread:$0]  %s44_s7, 2048, %s46_s8, [#allocation6], %s325_s26, %s325_s26, %s326_s27  }
   0xa   :  { %320 = dma.done.wait [#allocation4], 256  }
   0xb   :  { %321 = vsyncadd [#allocation4], 4294967040 }
   0xc   :  { %322 = dma.done.wait [#allocation6], 2304  }
   0xd   :  { %323 = vsyncadd [#allocation6], 4294964992  ;;  %v72_v0 = vld [vmem:[#allocation5 + $0x8] sm:$0xff]  ;;  %v71_v1 = vld [vmem:[#allocation5] sm:$0xff]  ;;  %vm74_vm0 = vcmask 130048   ;;  %v156_v38 = vstv %s388_s4  ;;  %vm208_vm2 = vcmask 7168  }
   0xe   :  { %95 = vmatpush.msra.mxu0 %v72_v0  ;;  %v69_v2 = vld [vmem:[#allocation3] sm:$0xff]  ;;  %v121_v3 = vld [vmem:[#allocation7 + $0x78] sm:$0xff]  ;;  %v120_v4 = vld [vmem:[#allocation7 + $0x70] sm:$0xff] }
   0xf   :  { %123 = vmatpush.msra.mxu1 %v121_v3  ;;  %219 = vmatpush.msra.mxu2 %v121_v3  ;;  %v119_v5 = vld [vmem:[#allocation7 + $0x68] sm:$0xff]  ;;  %v118_v6 = vld [vmem:[#allocation7 + $0x60] sm:$0xff]  ;;  %v117_v7 = vld [vmem:[#allocation7 + $0x58] sm:$0xff] }
  0x10   :  { %96 = vmatpush.msra.mxu0 %v71_v1  ;;  %v70_v8 = vld [vmem:[#allocation3 + $0x8] sm:$0xff]  ;;  %v116_v9 = vld [vmem:[#allocation7 + $0x50] sm:$0xff]  ;;  %v114_v11 = vld [vmem:[#allocation7 + $0x40] sm:$0xff] }
  0x11   :  { %217 = vmatmul.msk.f32.vlgmr.msra.gmra.mxu0 %vm74_vm0, %v69_v2  ;;  %124 = vmatpush.msra.mxu1 %v120_v4  ;;  %v115_v10 = vld [vmem:[#allocation7 + $0x48] sm:$0xff]  ;;  %v113_v12 = vld [vmem:[#allocation7 + $0x38] sm:$0xff]  ;;  %v112_v13 = vld [vmem:[#allocation7 + $0x30] sm:$0xff] }
  0x12   :  { %220 = vmatpush.msra.mxu2 %v120_v4  ;;  %v111_v14 = vld [vmem:[#allocation7 + $0x28] sm:$0xff]  ;;  %v110_v15 = vld [vmem:[#allocation7 + $0x20] sm:$0xff]  ;;  %v109_v16 = vld [vmem:[#allocation7 + $0x18] sm:$0xff] }
  0x13   :  { %125 = vmatpush.msra.mxu1 %v119_v5  ;;  %v108_v17 = vld [vmem:[#allocation7 + $0x10] sm:$0xff]  ;;  %v107_v18 = vld [vmem:[#allocation7 + $0x8] sm:$0xff]  ;;  %v106_v19 = vld [vmem:[#allocation7] sm:$0xff] }
  0x14   :  { %221 = vmatpush.msra.mxu2 %v119_v5  ;;  %v68_v20 = vld [vmem:[%s387_s3] sm:$0x7] }
  0x15   :  { %126 = vmatpush.msra.mxu1 %v118_v6  ;;  %v73_v21 = vperm.slane %v68_v20, 0  ;;  %v122_v28 = vperm.slane %v68_v20, 1  ;;  %v148_v31 = vperm.slane %v68_v20, 2 }
  0x16   :  { %222 = vmatpush.msra.mxu2 %v118_v6 }
  0x17   :  { %127 = vmatpush.msra.mxu1 %v117_v7 }
  0x18   :  { %223 = vmatpush.msra.mxu2 %v117_v7 }
  0x19   :  { %218 = vmatmul.msk.f32.gmra.mxu0 %vm74_vm0, %v70_v8  ;;  %128 = vmatpush.msra.mxu1 %v116_v9 }
  0x1a   :  { %224 = vmatpush.msra.mxu2 %v116_v9 }
  0x1b   :  { %129 = vmatpush.msra.mxu1 %v115_v10 }
  0x1c   :  { %225 = vmatpush.msra.mxu2 %v115_v10 }
  0x1d   :  { %130 = vmatpush.msra.mxu1 %v114_v11 }
  0x1e   :  { %226 = vmatpush.msra.mxu2 %v114_v11 }
  0x1f   :  { %131 = vmatpush.msra.mxu1 %v113_v12 }
  0x20   :  { %227 = vmatpush.msra.mxu2 %v113_v12 }
  0x21   :  { %132 = vmatpush.msra.mxu1 %v112_v13 }
  0x22   :  { %228 = vmatpush.msra.mxu2 %v112_v13 }
  0x23   :  { %133 = vmatpush.msra.mxu1 %v111_v14 }
  0x24   :  { %229 = vmatpush.msra.mxu2 %v111_v14 }
  0x25   :  { %134 = vmatpush.msra.mxu1 %v110_v15 }
  0x26   :  { %230 = vmatpush.msra.mxu2 %v110_v15 }
  0x27   :  { %135 = vmatpush.msra.mxu1 %v109_v16 }
  0x28   :  { %231 = vmatpush.msra.mxu2 %v109_v16 }
  0x29   :  { %136 = vmatpush.msra.mxu1 %v108_v17 }
  0x2a   :  { %232 = vmatpush.msra.mxu2 %v108_v17 }
  0x2b   :  { %137 = vmatpush.msra.mxu1 %v107_v18 }
  0x2c   :  { %233 = vmatpush.msra.mxu2 %v107_v18 }
  0x2d   :  { %138 = vmatpush.msra.mxu1 %v106_v19 }
  0x2e   :  { %234 = vmatpush.msra.mxu2 %v106_v19 }
  0x8e   :  { %v98_v22 = vpop.f32.mrf.mxu0 }
  0x8f   :  { %v99_v23 = vadd.f32 %v98_v22, %v73_v21 }
  0x91   :  { %v104_v24 = vmax.f32 %v99_v23, 0.0 }
  0x93   :  { %139 = vmatmul.f32.vlgmr.msra.gmra.mxu1 %v104_v24 }
  0x96   :  { %v101_v25 = vpop.f32.mrf.mxu0 }
  0x97   :  { %v102_v26 = vadd.f32 %v101_v25, %v73_v21 }
  0x99   :  { %v105_v27 = vmax.f32 %v102_v26, 0.0 }
  0x9b   :  { %142 = vmatmul.f32.vlgmr.msra.gmra.mxu2 %v105_v27 }
 0x110   :  { %v140_v29 = vpop.f32.mrf.mxu1 }
 0x111   :  { %v141_v30 = vadd.f32 %v140_v29, %v122_v28 }
 0x113   :  { %v146_v32 = vmax.f32 %v141_v30, 0.0 }
 0x115   :  { %v149_v33 = vmul.f32 %v148_v31, %v146_v32 }
 0x117   :  { %151 = vadd.xlane.f32.xlu0 %v149_v33 }
 0x11e   :  { %v143_v34 = vpop.f32.mrf.mxu2 }
 0x11f   :  { %v144_v35 = vadd.f32 %v143_v34, %v122_v28 }
 0x121   :  { %v147_v36 = vmax.f32 %v144_v35, 0.0 }
 0x123   :  { %v150_v37 = vmul.f32 %v148_v31, %v147_v36 }
 0x125   :  { %153 = vadd.xlane.f32.xlu0 %v150_v37 }
 0x18a   :  { %v152_v39 = vpop.xlane.xlu0 %151 }
 0x18b   :  { %v157_v40 = vadd.f32 %v156_v38, %v152_v39 }
 0x18d   :  { %v172_v41 = vmul.f32 -1.0, %v157_v40 }
 0x18f   :  { %v178_v42 = vand.u32 2147483647, %v172_v41  ;;  %v176_v58 = vmax.f32 %v172_v41, 0.0 }
 0x191   :  { %v180_v43 = vsub.f32 0.0, %v178_v42 }
 0x193   :  { %v182_v44 = vmul.f32 1.442695, %v180_v43 }
 0x195   :  { %240 = vpow2.f32 %v182_v44 }
 0x198   :  { %v154_v45 = vpop.xlane.xlu0 %153 }
 0x199   :  { %v158_v46 = vadd.f32 %v156_v38, %v154_v45 }
 0x19b   :  { %v241_v47 = vpop.eup %240  ;;  %v179_v48 = vand.u32 2147483647, %v158_v46  ;;  %v177_v5 = vmax.f32 %v158_v46, 0.0 }
 0x19c   :  { %v186_v49 = vadd.f32 1.0, %v241_v47  ;;  %v189_v50 = vmul.f32 -0.5, %v241_v47  ;;  %v192_v54 = vand.u32 2147483647, %v241_v47 }
 0x19d   :  { %v181_v51 = vsub.f32 0.0, %v179_v48 }
 0x19e   :  { %242 = vlog2.f32 %v186_v49  ;;  %v190_v53 = vadd.f32 1.0, %v189_v50  ;;  %vm193_vm1 = vcmp.lt.f32.partialorder %v192_v54, 0.0004427343 }
 0x19f   :  { %v184_v52 = vmul.f32 1.442695, %v181_v51 }
 0x1a0   :  { %v191_v57 = vmul.f32 %v241_v47, %v190_v53 }
 0x1a1   :  { %244 = vpow2.f32 %v184_v52 }
 0x1a4   :  { %v243_v55 = vpop.eup %242 }
 0x1a5   :  { %v188_v56 = vmul.f32 0.6931472, %v243_v55 }
 0x1a7   :  { %v245_v59 = vpop.eup %244  ;;  %v194_v60 = vsel %vm193_vm1, %v191_v57, %v188_v56 }
 0x1a8   :  { %v204_v61 = vadd.f32 %v194_v60, %v176_v58  ;;  %v195_v62 = vadd.f32 1.0, %v245_v59  ;;  %v198_v63 = vmul.f32 -0.5, %v245_v59  ;;  %v201_v1 = vand.u32 2147483647, %v245_v59 }
 0x1aa   :  { %209 = vst.msk [vmem:[%s389_s5] sm:$0xff] %vm208_vm2, %v204_v61  ;;  %246 = vlog2.f32 %v195_v62  ;;  %v199_v0 = vadd.f32 1.0, %v198_v63  ;;  %vm202_vm3 = vcmp.lt.f32.partialorder %v201_v1, 0.0004427343 }
 0x1ac   :  { %v200_v4 = vmul.f32 %v245_v59, %v199_v0 }
 0x1b0   :  { %v247_v2 = vpop.eup %246 }
 0x1b1   :  { %v197_v3 = vmul.f32 0.6931472, %v247_v2 }
 0x1b3   :  { %v203_v6 = vsel %vm202_vm3, %v200_v4, %v197_v3 }
 0x1b4   :  { %v205_v7 = vadd.f32 %v203_v6, %v177_v5 }
 0x1b6   :  { %210 = vst.msk [vmem:[%s389_s5 + $0x8] sm:$0xff] %vm208_vm2, %v205_v7 }
 0x1b7   :  { %215 = vsyncpa [#allocation4], 1 }
 0x1b8   :  { %216 = vsyncpa [#allocation6], 1 }

</bundles_post_ra>
